<compile_context>
chip_gen: v7x
topology: tpu7x:2x2x1
jax: 0.10.0
libtpu: 0.0.40
codegen_flags: <defaults>
</compile_context>

<pallas_src>
import jax
import jax.numpy as jnp
from jax import lax
from jax.experimental import pallas as pl
from jax.experimental.pallas import tpu as pltpu

_ACC_LANES = 128   # width of the per-row partial-sum accumulator
_MAX_CHUNKS = 32   # cap on the unrolled per-tile 128-lane chunk loop


# --------------------------------------------------------------------------
# static tiling heuristics (pure Python, run at trace time on static shapes)
# --------------------------------------------------------------------------
def _divisors(n):
    out, i = set(), 1
    while i * i <= n:
        if n % i == 0:
            out.add(i)
            out.add(n // i)
        i += 1
    return sorted(out)


def _choose_fold(c, hw):
    """Fold factor k: view (C, HW) as (C*k, HW//k).  Prefer full 8-sublane
    occupancy, then enough rows (~512) for MiB-scale blocks, then a 128-lane
    multiple extent, then the smallest k."""
    best_k, best_key = 1, None
    for k in _divisors(hw):
        lanes = hw // k
        if lanes < 128 and k != 1:
            continue
        rows = c * k
        key = (rows % 8 == 0, min(rows, 512), lanes % 128 == 0, -k)
        if best_key is None or key > best_key:
            best_k, best_key = k, key
    return best_k


def _choose_tile(lanes_ext, rows, itemsize, budget):
    """Lane tile along the folded spatial axis (multiple of 128 when tiled)."""
    if lanes_ext < 256 or (lanes_ext * rows * itemsize <= 2 * budget
                           and lanes_ext <= _MAX_CHUNKS * 128):
        return lanes_ext                      # whole extent in one block
    lanes = budget // max(1, rows * itemsize)
    lanes = min(lanes, _MAX_CHUNKS * 128, (lanes_ext // 128) * 128)
    return max(128, (lanes // 128) * 128)


def _vmem_capacity_bytes():
    try:
        info = pltpu.get_tpu_info()
        cap = getattr(info, "vmem_capacity_bytes", None)
        if cap:
            return int(cap)
    except Exception:
        pass
    return 64 * 1024 * 1024   # conservative default (v7x per-TensorCore VMEM)


# --------------------------------------------------------------------------
# kernel
# --------------------------------------------------------------------------
def _make_kernel(*, rows, tile_l, length, needs_mask, inv_hw, reg_accum):
    n_full = tile_l // 128
    tail_w = tile_l % 128     # nonzero only in the single-tile (unmasked) case

    def kernel(x_ref, w_ref, out_ref, acc_ref):
        # x_ref:   (1, rows, tile_l)  streamed x tile (rows on sublanes)
        # w_ref:   (E, rows)          folded gate weight, f32
        # out_ref: (1, E, 1)          per-sample logits (resident over tiles)
        # acc_ref: (rows, 128) f32    running partial sums (VMEM scratch)
        t = pl.program_id(1)

        @pl.when(t == 0)
        def _():
            acc_ref[...] = jnp.zeros_like(acc_ref)

        if needs_mask:
            lane = lax.broadcasted_iota(jnp.int32, (rows, 128), 1)
            base = t * tile_l

        def load_chunk(j):
            c = x_ref[0, :, j * 128:(j + 1) * 128].astype(jnp.float32)
            if needs_mask:
                # zero out lanes past the true spatial extent (partial tile)
                c = jnp.where(lane + (base + j * 128) < length, c, 0.0)
            return c

        if n_full:
            if reg_accum:
                # Small R: a few register partials keep the per-chunk VPU adds
                # off one long serial chain; single scratch RMW per tile.
                n_parts = min(4, n_full)
                parts = [load_chunk(j) for j in range(n_parts)]
                for j in range(n_parts, n_full):
                    parts[j % n_parts] = parts[j % n_parts] + load_chunk(j)
                total = parts[0]
                for p in parts[1:]:
                    total = total + p
                acc_ref[...] += total
            else:
                # Large R: accumulate straight into the VMEM scratch; the many
                # independent sublane rows provide the ILP.
                for j in range(n_full):
                    acc_ref[...] += load_chunk(j)

        if tail_w:   # only when the single tile equals a non-128-multiple extent
            c = x_ref[0, :, n_full * 128:n_full * 128 + tail_w]
            acc_ref[:, :tail_w] += c.astype(jnp.float32)

        @pl.when(t == pl.num_programs(1) - 1)
        def _():
            # Channel contraction on the MXU: (E,R) @ (R,128) -> (E,128),
            # then one tiny XLU lane reduce finishes the spatial mean.
            p = jnp.dot(w_ref[...], acc_ref[...],
                        preferred_element_type=jnp.float32)
            col = jnp.sum(p, axis=1, keepdims=True) * inv_hw        # (E, 1)
            out_ref[0] = col.astype(out_ref.dtype)

    return kernel


# --------------------------------------------------------------------------
# wrapper
# --------------------------------------------------------------------------
@jax.jit
def router_forward(x_nchw, weight):
    """x_nchw: (B, C, H, W); weight: (E, C) (nn.Linear layout, no bias).
    Returns logits (B, E) = mean_{h,w}(x) @ weight.T, in x's dtype."""
    b, c, h, w = x_nchw.shape
    e, c_in = weight.shape
    assert c_in == c
    hw = h * w
    itemsize = x_nchw.dtype.itemsize

    # ---- generation-aware budgets (derived, not hard-coded) ---------------
    vmem_cap = _vmem_capacity_bytes()
    # v7x (64 MiB VMEM, ~3.2 TB/s HBM) wants the biggest per-step blocks.
    block_budget = (4 << 20) if vmem_cap <= (64 << 20) else (2 << 20)

    # ---- static layout / tiling decisions ---------------------------------
    k = _choose_fold(c, hw)            # rows = C*k fill sublanes, lanes = HW/k
    rows = c * k
    lanes_ext = hw // k
    tile_l = _choose_tile(lanes_ext, rows, itemsize, block_budget)
    n_t = -(-lanes_ext // tile_l)
    needs_mask = (lanes_ext % tile_l) != 0 and n_t > 1
    assert not (needs_mask and (tile_l % 128)), "masked tiles must be 128-aligned"
    reg_accum = rows <= 64

    # ---- VMEM accounting ---------------------------------------------------
    x_block = rows * tile_l * itemsize
    acc_bytes = rows * _ACC_LANES * 4
    wf_bytes = e * rows * 4
    fixed = acc_bytes + 2 * wf_bytes + 2 * e * 4
    n_buf = 3 if (n_t >= 3 and 3 * x_block + fixed <= min(vmem_cap // 2, 24 << 20)) else 2
    need = n_buf * x_block + fixed
    vmem_limit = int(min(max(need + (4 << 20), 16 << 20), int(vmem_cap * 0.85)))

    # ---- operands ----------------------------------------------------------
    x_rl = x_nchw.reshape(b, rows, lanes_ext)          # contiguous view, no copy
    # Fold the channel->row replication into the (tiny) gate weight: (E, rows),
    # w_fold[e, r] = weight[e, r // k]; kept f32 for the MXU finalize.
    w_fold = jnp.repeat(weight.astype(jnp.float32), k, axis=1)

    x_spec_kwargs = {}
    if n_buf == 3:
        x_spec_kwargs["pipeline_mode"] = pl.Buffered(3)
    x_spec = pl.BlockSpec((1, rows, tile_l), lambda bi, ti: (bi, 0, ti),
                          **x_spec_kwargs)

    kernel = _make_kernel(rows=rows, tile_l=tile_l, length=lanes_ext,
                          needs_mask=needs_mask, inv_hw=1.0 / float(hw),
                          reg_accum=reg_accum)

    out = pl.pallas_call(
        kernel,
        out_shape=jax.ShapeDtypeStruct((b, e, 1), x_nchw.dtype),
        grid=(b, n_t),
        in_specs=[
            x_spec,                                             # streamed x
            pl.BlockSpec((e, rows), lambda bi, ti: (0, 0)),     # gate weight
        ],
        out_specs=pl.BlockSpec((1, e, 1), lambda bi, ti: (bi, 0, 0)),
        scratch_shapes=[pltpu.VMEM((rows, _ACC_LANES), jnp.float32)],
        compiler_params=pltpu.CompilerParams(
            dimension_semantics=("parallel", "arbitrary"),
            vmem_limit_bytes=vmem_limit,
        ),
    )(x_rl, w_fold)
    return out.reshape(b, e)          # free squeeze of the trailing unit dim


# --------------------------------------------------------------------------
# pure-JAX reference
# --------------------------------------------------------------------------
def router_reference(x_nchw, weight):
    pooled = jnp.mean(x_nchw.astype(jnp.float32), axis=(2, 3))
    return (pooled @ weight.astype(jnp.float32).T).astype(x_nchw.dtype)


if __name__ == "__main__":
    key = jax.random.PRNGKey(0)
    kx1, kx2, kx3, kx4, kw1, kw2, kw3 = jax.random.split(key, 7)

    def check(x, wt, name):
        out = jax.block_until_ready(router_forward(x, wt))
        ref = router_reference(x, wt)
        assert out.shape == ref.shape
        assert jnp.allclose(out, ref, rtol=1e-5, atol=1e-4), f"mismatch ({name})"

    # 1) Module-sized case: B=2, C=4, 16x16 spatial, 8 experts.
    #    C=4 < 8 sublanes -> folded to an (8, 128) full-sublane single tile.
    x1 = jax.random.normal(kx1, (2, 4, 16, 16), dtype=jnp.float32)
    w1 = 0.5 * jax.random.normal(kw1, (8, 4), dtype=jnp.float32)
    check(x1, w1, "C=4 16x16")

    # 2) 32x32 spatial: fold factor 8 -> (32, 128) rows-heavy single tile.
    x2 = jax.random.normal(kx2, (2, 4, 32, 32), dtype=jnp.float32)
    check(x2, w1, "C=4 32x32")

    # 3) C=128: exercises the large-R (scratch-RMW) accumulation path and a
    #    bigger MXU finalize, (16,256) @ (256,128).
    x3 = jax.random.normal(kx3, (2, 128, 16, 16), dtype=jnp.float32)
    w3 = 0.5 * jax.random.normal(kw2, (16, 128), dtype=jnp.float32)
    check(x3, w3, "C=128 16x16")

    # 4) 67x67 spatial (HW=4489, no useful divisors): exercises the
    #    multi-tile reduction with an iota-masked partial last tile.
    x4 = jax.random.normal(kx4, (2, 8, 67, 67), dtype=jnp.float32)
    w4 = 0.5 * jax.random.normal(kw3, (6, 8), dtype=jnp.float32)
    check(x4, w4, "C=8 67x67 masked")

    print("KERNEL_OK")
</pallas_src>

<mosaic_0001>
module attributes {stable_mosaic.version = 11 : i64} {
  func.func @kernel(%arg0: i32, %arg1: i32, %arg2: memref<1x8x128xf32, #tpu.memory_space<vmem>>, %arg3: memref<8x8xf32, #tpu.memory_space<vmem>>, %arg4: memref<1x8x1xf32, #tpu.memory_space<vmem>>, %arg5: memref<8x128xf32, #tpu.memory_space<vmem>>) attributes {dimension_semantics = [#tpu.dimension_semantics<parallel>, #tpu.dimension_semantics<arbitrary>], iteration_bounds = array<i64: 2, 1>, scalar_prefetch = 0 : i64, scratch_operands = 1 : i64, tpu.core_type = #tpu.core_type<tc>, window_params = [{transform_indices = @transform_0, window_bounds = array<i64: 1, 8, 128>}, {pipeline_mode = #tpu.pipeline_mode<synchronous>, transform_indices = @transform_1, window_bounds = array<i64: 8, 8>}, {transform_indices = @transform_2, window_bounds = array<i64: 1, 8, 1>}]} {
    %c0_i32 = arith.constant 0 : i32
    %0 = arith.cmpi eq, %arg1, %c0_i32 : i32
    %1 = arith.extui %0 : i1 to i32
    %c0_i32_0 = arith.constant 0 : i32
    %2 = arith.cmpi ne, %1, %c0_i32_0 : i32
    scf.if %2 {
      %cst = arith.constant 0.000000e+00 : f32
      %11 = vector.broadcast %cst : f32 to vector<8x128xf32>
      %c0_9 = arith.constant 0 : index
      %c0_10 = arith.constant 0 : index
      %12 = vector.load %arg5[%c0_9, %c0_10] : memref<8x128xf32, #tpu.memory_space<vmem>>, vector<8x128xf32>
      tpu.vector_store %arg5[%c0_9, %c0_10], %11 {strides = array<i32>} : memref<8x128xf32, #tpu.memory_space<vmem>>, vector<8x128xf32>,
    } else {
    }
    %c0 = arith.constant 0 : index
    %c0_1 = arith.constant 0 : index
    %c0_2 = arith.constant 0 : index
    %3 = vector.load %arg2[%c0, %c0_1, %c0_2] : memref<1x8x128xf32, #tpu.memory_space<vmem>>, vector<1x8x128xf32>
    %4 = vector.shape_cast %3 : vector<1x8x128xf32> to vector<8x128xf32>
    %c0_3 = arith.constant 0 : index
    %c0_4 = arith.constant 0 : index
    %5 = vector.load %arg5[%c0_3, %c0_4] : memref<8x128xf32, #tpu.memory_space<vmem>>, vector<8x128xf32>
    %6 = arith.addf %5, %4 : vector<8x128xf32>
    %c0_5 = arith.constant 0 : index
    %c0_6 = arith.constant 0 : index
    %7 = vector.load %arg5[%c0_5, %c0_6] : memref<8x128xf32, #tpu.memory_space<vmem>>, vector<8x128xf32>
    tpu.vector_store %arg5[%c0_5, %c0_6], %6 {strides = array<i32>} : memref<8x128xf32, #tpu.memory_space<vmem>>, vector<8x128xf32>,
    %c0_i32_7 = arith.constant 0 : i32
    %8 = arith.cmpi eq, %arg1, %c0_i32_7 : i32
    %9 = arith.extui %8 : i1 to i32
    %c0_i32_8 = arith.constant 0 : i32
    %10 = arith.cmpi ne, %9, %c0_i32_8 : i32
    scf.if %10 {
      %c0_9 = arith.constant 0 : index
      %c0_10 = arith.constant 0 : index
      %11 = vector.load %arg3[%c0_9, %c0_10] : memref<8x8xf32, #tpu.memory_space<vmem>>, vector<8x8xf32>
      %c0_11 = arith.constant 0 : index
      %c0_12 = arith.constant 0 : index
      %12 = vector.load %arg5[%c0_11, %c0_12] : memref<8x128xf32, #tpu.memory_space<vmem>>, vector<8x128xf32>
      %cst = arith.constant dense<0.000000e+00> : vector<8x128xf32>
      %13 = tpu.matmul %11, %12, %cst {dimension_numbers = #tpu.dot_dimension_numbers<[1], [0], [0], [1], [0, 0, 1, 1], [], []>} : vector<8x8xf32>, vector<8x128xf32>, vector<8x128xf32> -> vector<8x128xf32>
      %cst_13 = arith.constant dense<0.000000e+00> : vector<8xf32>
      %14 = vector.multi_reduction <add>, %13, %cst_13 [1] : vector<8x128xf32> to vector<8xf32>
      %15 = vector.shape_cast %14 : vector<8xf32> to vector<8x1xf32>
      %cst_14 = arith.constant 3.906250e-03 : f32
      %16 = vector.broadcast %cst_14 : f32 to vector<8x1xf32>
      %17 = arith.mulf %15, %16 : vector<8x1xf32>
      %c0_15 = arith.constant 0 : index
      %c0_16 = arith.constant 0 : index
      %c0_17 = arith.constant 0 : index
      %18 = vector.load %arg4[%c0_15, %c0_16, %c0_17] : memref<1x8x1xf32, #tpu.memory_space<vmem>>, vector<1x8x1xf32>
      %19 = vector.shape_cast %18 : vector<1x8x1xf32> to vector<8x1xf32>
      %20 = vector.shape_cast %17 : vector<8x1xf32> to vector<1x8x1xf32>
      tpu.vector_store %arg4[%c0_15, %c0_16, %c0_17], %20 {strides = array<i32>} : memref<1x8x1xf32, #tpu.memory_space<vmem>>, vector<1x8x1xf32>,
    } else {
    }
    return
  }
  func.func @transform_0(%arg0: i32, %arg1: i32) -> (i32, i32, i32) {
    %c0_i32 = arith.constant 0 : i32
    %c0_i32_0 = arith.constant 0 : i32
    return %arg0, %c0_i32, %arg1 : i32, i32, i32
  }
  func.func @transform_1(%arg0: i32, %arg1: i32) -> (i32, i32) {
    %c0_i32 = arith.constant 0 : i32
    %c0_i32_0 = arith.constant 0 : i32
    %c0_i32_1 = arith.constant 0 : i32
    return %c0_i32, %c0_i32_0 : i32, i32
  }
  func.func @transform_2(%arg0: i32, %arg1: i32) -> (i32, i32, i32) {
    %c0_i32 = arith.constant 0 : i32
    %c0_i32_0 = arith.constant 0 : i32
    %c0_i32_1 = arith.constant 0 : i32
    return %arg0, %c0_i32, %c0_i32_0 : i32, i32, i32
  }
}

</mosaic_0001>

<bundles_post_ra>
// kernel: router_forward.1
= control target key start
LH: loop header
LB: loop body
LE: loop exit
PB: predicated region body
PF: predicated region fallthrough
CT: control target
= control target key end

     0   :  { %s403_s9 = smov 0   ;;  %s405_s10 = smov 0   ;;  %s436_s0 = inlined_call_operand.vmem [shape: f32[2,8,128], index: 0, kind: input, shape index: {}]   ;;  %s437_s1 = inlined_call_operand.vmem [shape: f32[8,8], index: 1, kind: input, shape index: {}]   ;;  %s438_s2 = inlined_call_operand.vmem [shape: f32[2,8,1], index: 2, kind: output, shape index: {}]  }
   0x1   :  { %s407_s11 = smov 0  }
   0x2 LB: > { %s24_s12 = sadd.s32 1, %s380_s10  ;;  %p323_p0 = scmp.ge.s32.totalorder %s384_s11, 1  ;;  %s384_s11 = sphi %s407_s11, %s12_s11   ;;  %s380_s10 = sphi %s405_s10, %s440_s10   ;;  %s376_s9 = sphi %s403_s9, %s439_s9  }
   0x3   : > { %p26_p1 = scmp.ge.s32.totalorder %s24_s12, 2  ;;  %p128_p2 = scmp.lt.s32.totalorder %s384_s11, 3 }
   0x5   : > { %s442_s12 = smov (%p26_p1, %s24_s12), 0  ;;  %p129_p3 = pnand %p323_p0, %p128_p2 }
   0x6   : > { %p151_p4 = scmp.lt.s32.totalorder (!%p129_p3), %s376_s9, 1  ;;  %v386_v0 = vmov (!%p129_p3), 0.0   ;;  %vm387_vm0 = vmmov (!%p129_p3), 0   ;;  %v174_v1 = vld [vmem:[%s437_s1] sm:$0xff] (!%p129_p3)  ;;  %vm176_vm1 = vcmask (!%p129_p3), 64512   ;;  %vm253_vm2 = vcmask (!%p129_p3), 7168  }
   0x7   : > { %132 = sbr.rel (%p129_p3) target bundleno = 376 (0x178), region = 28  ;;  %331 = vmatprep.subr.mxu0 (!%p129_p3), %v386_v0  ;;  %333 = vmatprep.mubr.msk.f32.mxu0 (!%p129_p3), %vm387_vm0, %v386_v0 }
   0xe   : > { %s444_s9 = smov (!%p151_p4, %s376_s9), 1 }
   0xf   : > { %s324_s13 = sshll.u32 %s444_s9, 3 }
  0x10   : > { %s157_s16 = scalar_lea.vmem %s436_s0, %s324_s13  ;;  %s161_s21 = scalar_lea.vmem %s438_s2, %s324_s13 }
  0x11   : > { %v167_v2 = vld [vmem:[%s157_s16] sm:$0xff] }
  0x12   : > { %332 = vmatpush3.msra.mxu0 %v167_v2 }
  0x13   : > { %334 = vmatmul.mubr.msk.f32.vlgmr.msra.gmra.mrb[0].mxu0 %vm176_vm1, %v174_v1 }
  0xe6   : > { %v246_v3 = vpop.f32.mrb[0].mxu0 }
  0xe7   : > { %v335_v4 = vpop.f32.mrb[1].mxu0  ;;  %250 = vadd.xlane.f32.xlu0 %v246_v3 }
 0x174   : > { %v251_v5 = vpop.xlane.xlu0 %250 }
 0x175   : > { %v252_v6 = vmul.f32 0.00390625, %v251_v5 }
 0x177   : > { %254 = vst.msk [vmem:[%s161_s21] sm:$0xff] %vm253_vm2, %v252_v6 }
 0x178 PF: > { %s12_s11 = sadd.s32 1, %s384_s11   ;;  %s439_s9 = smov %s380_s10 }
 0x179   : > { %p9_p5 = scmp.ge.s32.totalorder %s12_s11, 4   ;;  %s440_s10 = smov %s442_s12 }
 0x17b   :  { %11 = sbr.rel (!%p9_p5) target bundleno = 2 (0x2), region = 66 }

</bundles_post_ra>
